<compile_context>
chip_gen: v7x
topology: tpu7x:2x2x1
jax: 0.10.0
libtpu: 0.0.40
codegen_flags: <defaults>
</compile_context>

<pallas_src>
import functools

import jax
import jax.numpy as jnp
from jax.experimental import pallas as pl
from jax.experimental.pallas import tpu as pltpu

HIDDEN = 128
EPS = 1e-5


# ------------------------------ small helpers ----------------------------------


def _round_up(n, m):
    return ((n + m - 1) // m) * m


def _tpu_defaults():
    """Per-generation tiling / VMEM budgets (v7x: 64 MiB VMEM, v5e/v6e: 128 MiB)."""
    vmem_phys = 64 * 1024 * 1024                      # conservative fallback
    try:
        info = pltpu.get_tpu_info()
        vmem_phys = int(getattr(info, "vmem_capacity_bytes", vmem_phys))
    except Exception:
        pass
    if vmem_phys >= 100 * 1024 * 1024:                # v5e / v6e
        return dict(tile_rows=4096,
                    vmem_limit=96 * 1024 * 1024,
                    fused_budget=48 * 1024 * 1024)
    return dict(tile_rows=2048,                       # v7x-class
                vmem_limit=44 * 1024 * 1024,
                fused_budget=26 * 1024 * 1024)


def _fold_bn(st, gb, b_true):
    """Combine per-tile partial (sum, sum(h^2)) into scale/shift: bn(h)==h*scale+shift."""
    s = jnp.sum(st[:, 0, :], axis=0, keepdims=True)
    sq = jnp.sum(st[:, 1, :], axis=0, keepdims=True)
    mean = s / b_true
    var = jnp.maximum(sq / b_true - mean * mean, 0.0)      # clamp one-pass variance
    scale = gb[0:1, :] * jax.lax.rsqrt(var + EPS)
    shift = gb[1:2, :] - mean * scale
    return jnp.concatenate([scale, shift], axis=0)         # (2, 128)


# --------------------------- tiled-path kernel bodies ---------------------------


def _partial_stats(h, st_ref, *, tm, b_true, needs_mask):
    """Write this tile's masked partial sum / sum(h^2) into its (1,2,128) block."""
    if needs_mask:
        rows = (jax.lax.broadcasted_iota(jnp.int32, (tm, 1), 0)
                + pl.program_id(0) * tm)
        h = jnp.where(rows < b_true, h, 0.0)
    st_ref[0, 0:1, :] = jnp.sum(h, axis=0, keepdims=True)
    st_ref[0, 1:2, :] = jnp.sum(h * h, axis=0, keepdims=True)


def _stage1_kernel(x_ref, w0_ref, b0_ref, w1_ref, y0_ref, st_ref,
                   *, tm, b_true, needs_mask):
    """y0 = relu(x@W0+b0) (stored bf16);  h1 = y0@R1W1;  BN1 partial stats."""
    f32 = jnp.float32
    y0 = jnp.maximum(
        jnp.dot(x_ref[...], w0_ref[...], preferred_element_type=f32) + b0_ref[...],
        0.0)
    y0b = y0.astype(jnp.bfloat16)
    y0_ref[...] = y0b
    h = jnp.dot(y0b, w1_ref[...], preferred_element_type=f32)
    _partial_stats(h, st_ref, tm=tm, b_true=b_true, needs_mask=needs_mask)


def _halfblock_stats_kernel(y_ref, ss_ref, wa_ref, wb_ref, st_ref,
                            *, tm, b_true, needs_mask):
    """Recompute hA = y@Wa; a = relu(bn(hA)); hB = a@Wb; next-BN partial stats."""
    f32 = jnp.float32
    ha = jnp.dot(y_ref[...], wa_ref[...], preferred_element_type=f32)
    a = jnp.maximum(ha * ss_ref[0:1, :] + ss_ref[1:2, :], 0.0)
    hb = jnp.dot(a.astype(jnp.bfloat16), wb_ref[...], preferred_element_type=f32)
    _partial_stats(hb, st_ref, tm=tm, b_true=b_true, needs_mask=needs_mask)


def _stage3_kernel(y0_ref, ss1_ref, ss2_ref, wa_ref, wb_ref, wc_ref,
                   y1_ref, st_ref, *, tm, b_true, needs_mask):
    """Recompute h1,h2 from y0; y1 = relu(y0 + bn2(h2)) (stored bf16); h3 stats."""
    f32 = jnp.float32
    y0b = y0_ref[...]
    h1 = jnp.dot(y0b, wa_ref[...], preferred_element_type=f32)
    a1 = jnp.maximum(h1 * ss1_ref[0:1, :] + ss1_ref[1:2, :], 0.0)
    h2 = jnp.dot(a1.astype(jnp.bfloat16), wb_ref[...], preferred_element_type=f32)
    y1 = jnp.maximum(y0b.astype(f32) + h2 * ss2_ref[0:1, :] + ss2_ref[1:2, :], 0.0)
    y1b = y1.astype(jnp.bfloat16)
    y1_ref[...] = y1b
    h3 = jnp.dot(y1b, wc_ref[...], preferred_element_type=f32)
    _partial_stats(h3, st_ref, tm=tm, b_true=b_true, needs_mask=needs_mask)


def _stage5_kernel(y1_ref, ss3_ref, ss4_ref, wa_ref, wb_ref, wo_t_ref, row_ref):
    """Recompute h3,h4 from y1; y2 = relu(y1 + bn4(h4)); packed row = wo^T . y2^T."""
    f32 = jnp.float32
    y1b = y1_ref[...]
    h3 = jnp.dot(y1b, wa_ref[...], preferred_element_type=f32)
    a3 = jnp.maximum(h3 * ss3_ref[0:1, :] + ss3_ref[1:2, :], 0.0)
    h4 = jnp.dot(a3.astype(jnp.bfloat16), wb_ref[...], preferred_element_type=f32)
    y2 = jnp.maximum(y1b.astype(f32) + h4 * ss4_ref[0:1, :] + ss4_ref[1:2, :], 0.0)
    # Lane-dense (1, tm) output: contract the feature axis of both operands.
    row_ref[...] = jax.lax.dot_general(
        wo_t_ref[...], y2.astype(jnp.bfloat16),
        dimension_numbers=(((1,), (1,)), ((), ())),
        preferred_element_type=f32)


# ----------------------------- fused-path kernel --------------------------------


def _fused_kernel(x_ref, w0_ref, b0_ref, w1_ref, gb1_ref, w2_ref, gb2_ref,
                  w3_ref, gb3_ref, w4_ref, gb4_ref, wo_t_ref, row_ref,
                  *, b_true, bp, needs_mask):
    """Whole forward (batch resident in VMEM); all 4 BN stats computed in-kernel."""
    f32 = jnp.float32
    bf16 = jnp.bfloat16

    def bn(h, gb_ref):
        hm = h
        if needs_mask:
            rows = jax.lax.broadcasted_iota(jnp.int32, (bp, 1), 0)
            hm = jnp.where(rows < b_true, h, 0.0)
        inv_b = jnp.float32(1.0 / b_true)
        mean = jnp.sum(hm, axis=0, keepdims=True) * inv_b
        var = jnp.maximum(jnp.sum(hm * hm, axis=0, keepdims=True) * inv_b
                          - mean * mean, 0.0)
        scale = gb_ref[0:1, :] * jax.lax.rsqrt(var + EPS)
        shift = gb_ref[1:2, :] - mean * scale
        return h * scale + shift

    y0 = jnp.maximum(
        jnp.dot(x_ref[...], w0_ref[...], preferred_element_type=f32) + b0_ref[...],
        0.0)
    y0b = y0.astype(bf16)                                   # same rounding as tiled path
    h = jnp.dot(y0b, w1_ref[...], preferred_element_type=f32)
    a = jnp.maximum(bn(h, gb1_ref), 0.0)
    h = jnp.dot(a.astype(bf16), w2_ref[...], preferred_element_type=f32)
    y1 = jnp.maximum(y0b.astype(f32) + bn(h, gb2_ref), 0.0)
    y1b = y1.astype(bf16)
    h = jnp.dot(y1b, w3_ref[...], preferred_element_type=f32)
    a = jnp.maximum(bn(h, gb3_ref), 0.0)
    h = jnp.dot(a.astype(bf16), w4_ref[...], preferred_element_type=f32)
    y2 = jnp.maximum(y1b.astype(f32) + bn(h, gb4_ref), 0.0)
    row_ref[...] = jax.lax.dot_general(
        wo_t_ref[...], y2.astype(bf16),
        dimension_numbers=(((1,), (1,)), ((), ())),
        preferred_element_type=f32)


# --------------------------------- wrappers --------------------------------------


def _forward_fused(x_bf, kp, B, bp, cfg):
    needs_mask = bp != B
    if needs_mask:
        x_bf = jnp.pad(x_bf, ((0, bp - B), (0, 0)))
    row = pl.pallas_call(
        functools.partial(_fused_kernel, b_true=B, bp=bp, needs_mask=needs_mask),
        out_shape=jax.ShapeDtypeStruct((1, bp), jnp.float32),
        compiler_params=pltpu.CompilerParams(vmem_limit_bytes=cfg["vmem_limit"]),
    )(x_bf, kp["w0"], kp["b0"], kp["r1w1"], kp["gb1"], kp["r1w2"], kp["gb2"],
      kp["r2w1"], kp["gb3"], kp["r2w2"], kp["gb4"], kp["wo_t"])
    out = jnp.maximum(row + kp["bo"], 0.0)      # negligible (1, bp) epilogue
    return out[0, :B][:, None]


def _forward_tiled(x_bf, kp, B, n_part, tile_rows, cfg):
    tm = max(128, _round_up(min(int(tile_rows), _round_up(B, 128)), 128))
    bp = _round_up(B, tm)
    nt = bp // tm
    needs_mask = bp != B
    if needs_mask:
        x_bf = jnp.pad(x_bf, ((0, bp - B), (0, 0)))

    f32 = jnp.float32
    bf16 = jnp.bfloat16
    kw = dict(tm=tm, b_true=B, needs_mask=needs_mask)
    cp = pltpu.CompilerParams(dimension_semantics=("parallel",),
                              vmem_limit_bytes=cfg["vmem_limit"])

    act_spec = pl.BlockSpec((tm, HIDDEN), lambda i: (i, 0))       # streamed carry

    def res_spec(shape):                                          # VMEM-resident param
        return pl.BlockSpec(shape, lambda i: (0,) * len(shape))

    st_spec = pl.BlockSpec((1, 2, HIDDEN), lambda i: (i, 0, 0))   # per-tile partials
    st_shape = jax.ShapeDtypeStruct((nt, 2, HIDDEN), f32)
    carry_shape = jax.ShapeDtypeStruct((bp, HIDDEN), bf16)

    # Stage 1: fc1 (+ bf16 carry y0) + BN1 partial stats.
    y0, st1 = pl.pallas_call(
        functools.partial(_stage1_kernel, **kw),
        grid=(nt,),
        in_specs=[pl.BlockSpec((tm, n_part), lambda i: (i, 0)),
                  res_spec((n_part, HIDDEN)), res_spec((1, HIDDEN)),
                  res_spec((HIDDEN, HIDDEN))],
        out_specs=(act_spec, st_spec),
        out_shape=(carry_shape, st_shape),
        compiler_params=cp,
    )(x_bf, kp["w0"], kp["b0"], kp["r1w1"])
    ss1 = _fold_bn(st1, kp["gb1"], B)

    # Stage 2: recompute h1 from y0, bn1+relu, h2; BN2 partial stats (no HBM write).
    st2 = pl.pallas_call(
        functools.partial(_halfblock_stats_kernel, **kw),
        grid=(nt,),
        in_specs=[act_spec, res_spec((2, HIDDEN)),
                  res_spec((HIDDEN, HIDDEN)), res_spec((HIDDEN, HIDDEN))],
        out_specs=st_spec,
        out_shape=st_shape,
        compiler_params=cp,
    )(y0, ss1, kp["r1w1"], kp["r1w2"])
    ss2 = _fold_bn(st2, kp["gb2"], B)

    # Stage 3: recompute h1,h2 from y0; y1 carry (bf16); BN3 partial stats.
    y1, st3 = pl.pallas_call(
        functools.partial(_stage3_kernel, **kw),
        grid=(nt,),
        in_specs=[act_spec, res_spec((2, HIDDEN)), res_spec((2, HIDDEN)),
                  res_spec((HIDDEN, HIDDEN)), res_spec((HIDDEN, HIDDEN)),
                  res_spec((HIDDEN, HIDDEN))],
        out_specs=(act_spec, st_spec),
        out_shape=(carry_shape, st_shape),
        compiler_params=cp,
    )(y0, ss1, ss2, kp["r1w1"], kp["r1w2"], kp["r2w1"])
    ss3 = _fold_bn(st3, kp["gb3"], B)

    # Stage 4: recompute h3 from y1, bn3+relu, h4; BN4 partial stats.
    st4 = pl.pallas_call(
        functools.partial(_halfblock_stats_kernel, **kw),
        grid=(nt,),
        in_specs=[act_spec, res_spec((2, HIDDEN)),
                  res_spec((HIDDEN, HIDDEN)), res_spec((HIDDEN, HIDDEN))],
        out_specs=st_spec,
        out_shape=st_shape,
        compiler_params=cp,
    )(y1, ss3, kp["r2w1"], kp["r2w2"])
    ss4 = _fold_bn(st4, kp["gb4"], B)

    # Stage 5: recompute h3,h4 from y1; y2; packed lane-dense (1, bp) output row.
    row = pl.pallas_call(
        _stage5_kernel,
        grid=(nt,),
        in_specs=[act_spec, res_spec((2, HIDDEN)), res_spec((2, HIDDEN)),
                  res_spec((HIDDEN, HIDDEN)), res_spec((HIDDEN, HIDDEN)),
                  res_spec((1, HIDDEN))],
        out_specs=pl.BlockSpec((1, tm), lambda i: (0, i)),
        out_shape=jax.ShapeDtypeStruct((1, bp), f32),
        compiler_params=cp,
    )(y1, ss3, ss4, kp["r2w1"], kp["r2w2"], kp["wo_t"])

    out = jnp.maximum(row + kp["bo"], 0.0)      # negligible (1, bp) epilogue
    return out[0, :B][:, None]


def res_network_pallas(x, kp, *, tile_rows=None, force_tiled=False):
    """x: (B, n_particles) f32.  kp: packed params from pack_params()."""
    B, n_part = x.shape
    cfg = _tpu_defaults()
    x_bf = x.astype(jnp.bfloat16)               # pre-cast once (review item)

    # Fused fast path: whole padded batch (and ~6 live f32 activations) fits VMEM.
    bp_fused = _round_up(max(B, 1), 8)
    fused_bytes = bp_fused * (HIDDEN * 4 * 6 + 2 * n_part)
    if not force_tiled and fused_bytes <= cfg["fused_budget"]:
        return _forward_fused(x_bf, kp, B, bp_fused, cfg)

    return _forward_tiled(x_bf, kp, B, n_part,
                          tile_rows if tile_rows else cfg["tile_rows"], cfg)


# ----------------------- parameters (deterministic) -----------------------------


def _linear_params(key, fan_in, fan_out):
    """nn.Linear default init (U(+-1/sqrt(fan_in))), weight laid out (in, out)."""
    kw, kb = jax.random.split(key)
    bound = 1.0 / float(fan_in) ** 0.5
    w = jax.random.uniform(kw, (fan_in, fan_out), jnp.float32, -bound, bound)
    b = jax.random.uniform(kb, (1, fan_out), jnp.float32, -bound, bound)
    return w, b


def make_params(key, n_particles):
    """Full-precision 'module state' (all biases present, PyTorch semantics)."""
    ks = jax.random.split(key, 10)
    p = {}
    p["w0"], p["b0"] = _linear_params(ks[0], n_particles, HIDDEN)
    p["r1w1"], p["r1b1"] = _linear_params(ks[1], HIDDEN, HIDDEN)
    p["r1w2"], p["r1b2"] = _linear_params(ks[2], HIDDEN, HIDDEN)
    p["r2w1"], p["r2b1"] = _linear_params(ks[3], HIDDEN, HIDDEN)
    p["r2w2"], p["r2b2"] = _linear_params(ks[4], HIDDEN, HIDDEN)
    p["wo"], p["bo"] = _linear_params(ks[5], HIDDEN, 1)
    # Fresh nn.BatchNorm1d has gamma=1, beta=0; use generic values so the affine
    # path is actually exercised by the checks below.
    for n, kk in zip(("1", "2", "3", "4"), ks[6:10]):
        kg, kb = jax.random.split(kk)
        p["g" + n] = jax.random.uniform(kg, (1, HIDDEN), jnp.float32, 0.5, 1.5)
        p["be" + n] = jax.random.uniform(kb, (1, HIDDEN), jnp.float32, -0.5, 0.5)
    return p


def pack_params(p):
    """Kernel-ready params: bf16 MXU weights, gamma/beta packed to (2,128),
    pre-BN biases dropped (cancelled by BN's mean subtraction), final weight
    stored transposed (1,128) for the lane-dense output contraction."""
    bf16 = jnp.bfloat16
    kp = {
        "w0": p["w0"].astype(bf16),
        "b0": p["b0"],
        "r1w1": p["r1w1"].astype(bf16),
        "r1w2": p["r1w2"].astype(bf16),
        "r2w1": p["r2w1"].astype(bf16),
        "r2w2": p["r2w2"].astype(bf16),
        "wo_t": p["wo"].T.astype(bf16),     # (1, 128)
        "bo": p["bo"],                      # (1, 1)
    }
    for n in ("1", "2", "3", "4"):
        kp["gb" + n] = jnp.concatenate([p["g" + n], p["be" + n]], axis=0)
    return kp


# ----------------------------- pure-JAX reference --------------------------------


def res_network_ref(x, p, *, mixed=False):
    """PyTorch forward semantics (training-mode BN, all biases, two-pass stats).
    mixed=True additionally models the kernel's precision choices: bf16 matmul
    operands and bf16 rounding of the residual carries."""
    f32 = jnp.float32

    def dot(a, w):
        if mixed:
            return jnp.dot(a.astype(jnp.bfloat16), w.astype(jnp.bfloat16),
                           preferred_element_type=f32)
        return jnp.dot(a, w, preferred_element_type=f32)

    def carry(y):
        return y.astype(jnp.bfloat16).astype(f32) if mixed else y

    def bn(h, g, b):
        m = jnp.mean(h, axis=0, keepdims=True)
        v = jnp.mean((h - m) ** 2, axis=0, keepdims=True)   # biased (training mode)
        return (h - m) / jnp.sqrt(v + EPS) * g + b

    relu = lambda v: jnp.maximum(v, 0.0)

    y = carry(relu(dot(x, p["w0"]) + p["b0"]))
    h = relu(bn(dot(y, p["r1w1"]) + p["r1b1"], p["g1"], p["be1"]))
    y = carry(relu(y + bn(dot(h, p["r1w2"]) + p["r1b2"], p["g2"], p["be2"])))
    h = relu(bn(dot(y, p["r2w1"]) + p["r2b1"], p["g3"], p["be3"]))
    y = relu(y + bn(dot(h, p["r2w2"]) + p["r2b2"], p["g4"], p["be4"]))
    return relu(dot(y, p["wo"]) + p["bo"])


# ------------------------------------ main ----------------------------------------


if __name__ == "__main__":
    root = jax.random.PRNGKey(0)
    k_x1, k_x2, k_p = jax.random.split(root, 3)
    n_particles = 16

    raw = make_params(k_p, n_particles)
    kp = pack_params(raw)

    # Config A: small ragged batch -> fused single-call path (padding + BN masking).
    x_a = jax.random.normal(k_x1, (20, n_particles), jnp.float32)
    out_a = jax.block_until_ready(jax.jit(res_network_pallas)(x_a, kp))

    # Config B: forced multi-tile path (3 batch tiles of 128, padded rows masked,
    # cross-tile partial BN stats, packed lane-dense output).
    x_b = jax.random.normal(k_x2, (300, n_particles), jnp.float32)
    run_b = jax.jit(functools.partial(res_network_pallas,
                                      tile_rows=128, force_tiled=True))
    out_b = jax.block_until_ready(run_b(x_b, kp))

    for x, out in ((x_a, out_a), (x_b, out_b)):
        assert out.shape == (x.shape[0], 1), out.shape
        ref_mixed = res_network_ref(x, raw, mixed=True)
        ref_f32 = res_network_ref(x, raw, mixed=False)
        # Tight check against the same mixed-precision math (validates tiling,
        # full-batch BN stats, recomputation, folded scale/shift, packed output).
        assert jnp.allclose(out, ref_mixed, atol=2e-3, rtol=2e-3), \
            float(jnp.max(jnp.abs(out - ref_mixed)))
        # Loose sanity bound against the pure-f32 PyTorch forward.
        assert jnp.allclose(out, ref_f32, atol=1e-1, rtol=1e-1), \
            float(jnp.max(jnp.abs(out - ref_f32)))

    print("KERNEL_OK")
</pallas_src>

<mosaic_0001>
module attributes {stable_mosaic.version = 11 : i64} {
  func.func @_fused_kernel(%arg0: memref<24x16xbf16, #tpu.memory_space<vmem>>, %arg1: memref<16x128xbf16, #tpu.memory_space<vmem>>, %arg2: memref<1x128xf32, #tpu.memory_space<vmem>>, %arg3: memref<128x128xbf16, #tpu.memory_space<vmem>>, %arg4: memref<2x128xf32, #tpu.memory_space<vmem>>, %arg5: memref<128x128xbf16, #tpu.memory_space<vmem>>, %arg6: memref<2x128xf32, #tpu.memory_space<vmem>>, %arg7: memref<128x128xbf16, #tpu.memory_space<vmem>>, %arg8: memref<2x128xf32, #tpu.memory_space<vmem>>, %arg9: memref<128x128xbf16, #tpu.memory_space<vmem>>, %arg10: memref<2x128xf32, #tpu.memory_space<vmem>>, %arg11: memref<1x128xbf16, #tpu.memory_space<vmem>>, %arg12: memref<1x24xf32, #tpu.memory_space<vmem>>) attributes {dimension_semantics = [], scalar_prefetch = 0 : i64, scratch_operands = 0 : i64, tpu.core_type = #tpu.core_type<tc>} {
    %c0 = arith.constant 0 : index
    %c0_0 = arith.constant 0 : index
    %0 = vector.load %arg0[%c0, %c0_0] : memref<24x16xbf16, #tpu.memory_space<vmem>>, vector<24x16xbf16>
    %c0_1 = arith.constant 0 : index
    %c0_2 = arith.constant 0 : index
    %1 = vector.load %arg1[%c0_1, %c0_2] : memref<16x128xbf16, #tpu.memory_space<vmem>>, vector<16x128xbf16>
    %cst = arith.constant dense<0.000000e+00> : vector<24x128xf32>
    %2 = tpu.matmul %0, %1, %cst {dimension_numbers = #tpu.dot_dimension_numbers<[1], [0], [0], [1], [0, 0, 1, 1], [], []>} : vector<24x16xbf16>, vector<16x128xbf16>, vector<24x128xf32> -> vector<24x128xf32>
    %c0_3 = arith.constant 0 : index
    %c0_4 = arith.constant 0 : index
    %3 = vector.load %arg2[%c0_3, %c0_4] : memref<1x128xf32, #tpu.memory_space<vmem>>, vector<1x128xf32>
    %4 = vector.broadcast %3 : vector<1x128xf32> to vector<24x128xf32>
    %5 = arith.addf %2, %4 : vector<24x128xf32>
    %cst_5 = arith.constant 0.000000e+00 : f32
    %6 = vector.broadcast %cst_5 : f32 to vector<24x128xf32>
    %7 = arith.maximumf %5, %6 : vector<24x128xf32>
    %8 = arith.truncf %7 : vector<24x128xf32> to vector<24x128xbf16>
    %c0_6 = arith.constant 0 : index
    %c0_7 = arith.constant 0 : index
    %9 = vector.load %arg3[%c0_6, %c0_7] : memref<128x128xbf16, #tpu.memory_space<vmem>>, vector<128x128xbf16>
    %cst_8 = arith.constant dense<0.000000e+00> : vector<24x128xf32>
    %10 = tpu.matmul %8, %9, %cst_8 {dimension_numbers = #tpu.dot_dimension_numbers<[1], [0], [0], [1], [0, 0, 1, 1], [], []>} : vector<24x128xbf16>, vector<128x128xbf16>, vector<24x128xf32> -> vector<24x128xf32>
    %11 = tpu.iota {dimensions = array<i32: 0>} : vector<24x1xi32>
    %c20_i32 = arith.constant 20 : i32
    %12 = vector.broadcast %c20_i32 : i32 to vector<24x1xi32>
    %13 = arith.cmpi slt, %11, %12 : vector<24x1xi32>
    %cst_9 = arith.constant 0.000000e+00 : f32
    %14 = vector.shape_cast %13 : vector<24x1xi1> to vector<24x1xi1>
    %15 = vector.broadcast %14 : vector<24x1xi1> to vector<24x128xi1>
    %16 = vector.broadcast %cst_9 : f32 to vector<24x128xf32>
    %17 = arith.select %15, %10, %16 : vector<24x128xi1>, vector<24x128xf32>
    %cst_10 = arith.constant dense<0.000000e+00> : vector<128xf32>
    %18 = vector.multi_reduction <add>, %17, %cst_10 [0] : vector<24x128xf32> to vector<128xf32>
    %19 = vector.shape_cast %18 : vector<128xf32> to vector<1x128xf32>
    %cst_11 = arith.constant 5.000000e-02 : f32
    %20 = vector.broadcast %cst_11 : f32 to vector<1x128xf32>
    %21 = arith.mulf %19, %20 : vector<1x128xf32>
    %22 = arith.mulf %17, %17 : vector<24x128xf32>
    %cst_12 = arith.constant dense<0.000000e+00> : vector<128xf32>
    %23 = vector.multi_reduction <add>, %22, %cst_12 [0] : vector<24x128xf32> to vector<128xf32>
    %24 = vector.shape_cast %23 : vector<128xf32> to vector<1x128xf32>
    %cst_13 = arith.constant 5.000000e-02 : f32
    %25 = vector.broadcast %cst_13 : f32 to vector<1x128xf32>
    %26 = arith.mulf %24, %25 : vector<1x128xf32>
    %27 = arith.mulf %21, %21 : vector<1x128xf32>
    %28 = arith.subf %26, %27 : vector<1x128xf32>
    %cst_14 = arith.constant 0.000000e+00 : f32
    %29 = vector.broadcast %cst_14 : f32 to vector<1x128xf32>
    %30 = arith.maximumf %28, %29 : vector<1x128xf32>
    %c0_15 = arith.constant 0 : index
    %c0_16 = arith.constant 0 : index
    %31 = vector.load %arg4[%c0_15, %c0_16] : memref<2x128xf32, #tpu.memory_space<vmem>>, vector<1x128xf32>
    %cst_17 = arith.constant 9.99999974E-6 : f32
    %32 = vector.broadcast %cst_17 : f32 to vector<1x128xf32>
    %33 = arith.addf %30, %32 : vector<1x128xf32>
    %34 = math.rsqrt %33 : vector<1x128xf32>
    %35 = arith.mulf %31, %34 : vector<1x128xf32>
    %c1 = arith.constant 1 : index
    %c0_18 = arith.constant 0 : index
    %36 = vector.load %arg4[%c1, %c0_18] : memref<2x128xf32, #tpu.memory_space<vmem>>, vector<1x128xf32>
    %37 = arith.mulf %21, %35 : vector<1x128xf32>
    %38 = arith.subf %36, %37 : vector<1x128xf32>
    %39 = vector.broadcast %35 : vector<1x128xf32> to vector<24x128xf32>
    %40 = arith.mulf %10, %39 : vector<24x128xf32>
    %41 = vector.broadcast %38 : vector<1x128xf32> to vector<24x128xf32>
    %42 = arith.addf %40, %41 : vector<24x128xf32>
    %cst_19 = arith.constant 0.000000e+00 : f32
    %43 = vector.broadcast %cst_19 : f32 to vector<24x128xf32>
    %44 = arith.maximumf %42, %43 : vector<24x128xf32>
    %45 = arith.truncf %44 : vector<24x128xf32> to vector<24x128xbf16>
    %c0_20 = arith.constant 0 : index
    %c0_21 = arith.constant 0 : index
    %46 = vector.load %arg5[%c0_20, %c0_21] : memref<128x128xbf16, #tpu.memory_space<vmem>>, vector<128x128xbf16>
    %cst_22 = arith.constant dense<0.000000e+00> : vector<24x128xf32>
    %47 = tpu.matmul %45, %46, %cst_22 {dimension_numbers = #tpu.dot_dimension_numbers<[1], [0], [0], [1], [0, 0, 1, 1], [], []>} : vector<24x128xbf16>, vector<128x128xbf16>, vector<24x128xf32> -> vector<24x128xf32>
    %48 = arith.extf %8 : vector<24x128xbf16> to vector<24x128xf32>
    %49 = tpu.iota {dimensions = array<i32: 0>} : vector<24x1xi32>
    %c20_i32_23 = arith.constant 20 : i32
    %50 = vector.broadcast %c20_i32_23 : i32 to vector<24x1xi32>
    %51 = arith.cmpi slt, %49, %50 : vector<24x1xi32>
    %cst_24 = arith.constant 0.000000e+00 : f32
    %52 = vector.shape_cast %51 : vector<24x1xi1> to vector<24x1xi1>
    %53 = vector.broadcast %52 : vector<24x1xi1> to vector<24x128xi1>
    %54 = vector.broadcast %cst_24 : f32 to vector<24x128xf32>
    %55 = arith.select %53, %47, %54 : vector<24x128xi1>, vector<24x128xf32>
    %cst_25 = arith.constant dense<0.000000e+00> : vector<128xf32>
    %56 = vector.multi_reduction <add>, %55, %cst_25 [0] : vector<24x128xf32> to vector<128xf32>
    %57 = vector.shape_cast %56 : vector<128xf32> to vector<1x128xf32>
    %cst_26 = arith.constant 5.000000e-02 : f32
    %58 = vector.broadcast %cst_26 : f32 to vector<1x128xf32>
    %59 = arith.mulf %57, %58 : vector<1x128xf32>
    %60 = arith.mulf %55, %55 : vector<24x128xf32>
    %cst_27 = arith.constant dense<0.000000e+00> : vector<128xf32>
    %61 = vector.multi_reduction <add>, %60, %cst_27 [0] : vector<24x128xf32> to vector<128xf32>
    %62 = vector.shape_cast %61 : vector<128xf32> to vector<1x128xf32>
    %cst_28 = arith.constant 5.000000e-02 : f32
    %63 = vector.broadcast %cst_28 : f32 to vector<1x128xf32>
    %64 = arith.mulf %62, %63 : vector<1x128xf32>
    %65 = arith.mulf %59, %59 : vector<1x128xf32>
    %66 = arith.subf %64, %65 : vector<1x128xf32>
    %cst_29 = arith.constant 0.000000e+00 : f32
    %67 = vector.broadcast %cst_29 : f32 to vector<1x128xf32>
    %68 = arith.maximumf %66, %67 : vector<1x128xf32>
    %c0_30 = arith.constant 0 : index
    %c0_31 = arith.constant 0 : index
    %69 = vector.load %arg6[%c0_30, %c0_31] : memref<2x128xf32, #tpu.memory_space<vmem>>, vector<1x128xf32>
    %cst_32 = arith.constant 9.99999974E-6 : f32
    %70 = vector.broadcast %cst_32 : f32 to vector<1x128xf32>
    %71 = arith.addf %68, %70 : vector<1x128xf32>
    %72 = math.rsqrt %71 : vector<1x128xf32>
    %73 = arith.mulf %69, %72 : vector<1x128xf32>
    %c1_33 = arith.constant 1 : index
    %c0_34 = arith.constant 0 : index
    %74 = vector.load %arg6[%c1_33, %c0_34] : memref<2x128xf32, #tpu.memory_space<vmem>>, vector<1x128xf32>
    %75 = arith.mulf %59, %73 : vector<1x128xf32>
    %76 = arith.subf %74, %75 : vector<1x128xf32>
    %77 = vector.broadcast %73 : vector<1x128xf32> to vector<24x128xf32>
    %78 = arith.mulf %47, %77 : vector<24x128xf32>
    %79 = vector.broadcast %76 : vector<1x128xf32> to vector<24x128xf32>
    %80 = arith.addf %78, %79 : vector<24x128xf32>
    %81 = arith.addf %48, %80 : vector<24x128xf32>
    %cst_35 = arith.constant 0.000000e+00 : f32
    %82 = vector.broadcast %cst_35 : f32 to vector<24x128xf32>
    %83 = arith.maximumf %81, %82 : vector<24x128xf32>
    %84 = arith.truncf %83 : vector<24x128xf32> to vector<24x128xbf16>
    %c0_36 = arith.constant 0 : index
    %c0_37 = arith.constant 0 : index
    %85 = vector.load %arg7[%c0_36, %c0_37] : memref<128x128xbf16, #tpu.memory_space<vmem>>, vector<128x128xbf16>
    %cst_38 = arith.constant dense<0.000000e+00> : vector<24x128xf32>
    %86 = tpu.matmul %84, %85, %cst_38 {dimension_numbers = #tpu.dot_dimension_numbers<[1], [0], [0], [1], [0, 0, 1, 1], [], []>} : vector<24x128xbf16>, vector<128x128xbf16>, vector<24x128xf32> -> vector<24x128xf32>
    %87 = tpu.iota {dimensions = array<i32: 0>} : vector<24x1xi32>
    %c20_i32_39 = arith.constant 20 : i32
    %88 = vector.broadcast %c20_i32_39 : i32 to vector<24x1xi32>
    %89 = arith.cmpi slt, %87, %88 : vector<24x1xi32>
    %cst_40 = arith.constant 0.000000e+00 : f32
    %90 = vector.shape_cast %89 : vector<24x1xi1> to vector<24x1xi1>
    %91 = vector.broadcast %90 : vector<24x1xi1> to vector<24x128xi1>
    %92 = vector.broadcast %cst_40 : f32 to vector<24x128xf32>
    %93 = arith.select %91, %86, %92 : vector<24x128xi1>, vector<24x128xf32>
    %cst_41 = arith.constant dense<0.000000e+00> : vector<128xf32>
    %94 = vector.multi_reduction <add>, %93, %cst_41 [0] : vector<24x128xf32> to vector<128xf32>
    %95 = vector.shape_cast %94 : vector<128xf32> to vector<1x128xf32>
    %cst_42 = arith.constant 5.000000e-02 : f32
    %96 = vector.broadcast %cst_42 : f32 to vector<1x128xf32>
    %97 = arith.mulf %95, %96 : vector<1x128xf32>
    %98 = arith.mulf %93, %93 : vector<24x128xf32>
    %cst_43 = arith.constant dense<0.000000e+00> : vector<128xf32>
    %99 = vector.multi_reduction <add>, %98, %cst_43 [0] : vector<24x128xf32> to vector<128xf32>
    %100 = vector.shape_cast %99 : vector<128xf32> to vector<1x128xf32>
    %cst_44 = arith.constant 5.000000e-02 : f32
    %101 = vector.broadcast %cst_44 : f32 to vector<1x128xf32>
    %102 = arith.mulf %100, %101 : vector<1x128xf32>
    %103 = arith.mulf %97, %97 : vector<1x128xf32>
    %104 = arith.subf %102, %103 : vector<1x128xf32>
    %cst_45 = arith.constant 0.000000e+00 : f32
    %105 = vector.broadcast %cst_45 : f32 to vector<1x128xf32>
    %106 = arith.maximumf %104, %105 : vector<1x128xf32>
    %c0_46 = arith.constant 0 : index
    %c0_47 = arith.constant 0 : index
    %107 = vector.load %arg8[%c0_46, %c0_47] : memref<2x128xf32, #tpu.memory_space<vmem>>, vector<1x128xf32>
    %cst_48 = arith.constant 9.99999974E-6 : f32
    %108 = vector.broadcast %cst_48 : f32 to vector<1x128xf32>
    %109 = arith.addf %106, %108 : vector<1x128xf32>
    %110 = math.rsqrt %109 : vector<1x128xf32>
    %111 = arith.mulf %107, %110 : vector<1x128xf32>
    %c1_49 = arith.constant 1 : index
    %c0_50 = arith.constant 0 : index
    %112 = vector.load %arg8[%c1_49, %c0_50] : memref<2x128xf32, #tpu.memory_space<vmem>>, vector<1x128xf32>
    %113 = arith.mulf %97, %111 : vector<1x128xf32>
    %114 = arith.subf %112, %113 : vector<1x128xf32>
    %115 = vector.broadcast %111 : vector<1x128xf32> to vector<24x128xf32>
    %116 = arith.mulf %86, %115 : vector<24x128xf32>
    %117 = vector.broadcast %114 : vector<1x128xf32> to vector<24x128xf32>
    %118 = arith.addf %116, %117 : vector<24x128xf32>
    %cst_51 = arith.constant 0.000000e+00 : f32
    %119 = vector.broadcast %cst_51 : f32 to vector<24x128xf32>
    %120 = arith.maximumf %118, %119 : vector<24x128xf32>
    %121 = arith.truncf %120 : vector<24x128xf32> to vector<24x128xbf16>
    %c0_52 = arith.constant 0 : index
    %c0_53 = arith.constant 0 : index
    %122 = vector.load %arg9[%c0_52, %c0_53] : memref<128x128xbf16, #tpu.memory_space<vmem>>, vector<128x128xbf16>
    %cst_54 = arith.constant dense<0.000000e+00> : vector<24x128xf32>
    %123 = tpu.matmul %121, %122, %cst_54 {dimension_numbers = #tpu.dot_dimension_numbers<[1], [0], [0], [1], [0, 0, 1, 1], [], []>} : vector<24x128xbf16>, vector<128x128xbf16>, vector<24x128xf32> -> vector<24x128xf32>
    %124 = arith.extf %84 : vector<24x128xbf16> to vector<24x128xf32>
    %125 = tpu.iota {dimensions = array<i32: 0>} : vector<24x1xi32>
    %c20_i32_55 = arith.constant 20 : i32
    %126 = vector.broadcast %c20_i32_55 : i32 to vector<24x1xi32>
    %127 = arith.cmpi slt, %125, %126 : vector<24x1xi32>
    %cst_56 = arith.constant 0.000000e+00 : f32
    %128 = vector.shape_cast %127 : vector<24x1xi1> to vector<24x1xi1>
    %129 = vector.broadcast %128 : vector<24x1xi1> to vector<24x128xi1>
    %130 = vector.broadcast %cst_56 : f32 to vector<24x128xf32>
    %131 = arith.select %129, %123, %130 : vector<24x128xi1>, vector<24x128xf32>
    %cst_57 = arith.constant dense<0.000000e+00> : vector<128xf32>
    %132 = vector.multi_reduction <add>, %131, %cst_57 [0] : vector<24x128xf32> to vector<128xf32>
    %133 = vector.shape_cast %132 : vector<128xf32> to vector<1x128xf32>
    %cst_58 = arith.constant 5.000000e-02 : f32
    %134 = vector.broadcast %cst_58 : f32 to vector<1x128xf32>
    %135 = arith.mulf %133, %134 : vector<1x128xf32>
    %136 = arith.mulf %131, %131 : vector<24x128xf32>
    %cst_59 = arith.constant dense<0.000000e+00> : vector<128xf32>
    %137 = vector.multi_reduction <add>, %136, %cst_59 [0] : vector<24x128xf32> to vector<128xf32>
    %138 = vector.shape_cast %137 : vector<128xf32> to vector<1x128xf32>
    %cst_60 = arith.constant 5.000000e-02 : f32
    %139 = vector.broadcast %cst_60 : f32 to vector<1x128xf32>
    %140 = arith.mulf %138, %139 : vector<1x128xf32>
    %141 = arith.mulf %135, %135 : vector<1x128xf32>
    %142 = arith.subf %140, %141 : vector<1x128xf32>
    %cst_61 = arith.constant 0.000000e+00 : f32
    %143 = vector.broadcast %cst_61 : f32 to vector<1x128xf32>
    %144 = arith.maximumf %142, %143 : vector<1x128xf32>
    %c0_62 = arith.constant 0 : index
    %c0_63 = arith.constant 0 : index
    %145 = vector.load %arg10[%c0_62, %c0_63] : memref<2x128xf32, #tpu.memory_space<vmem>>, vector<1x128xf32>
    %cst_64 = arith.constant 9.99999974E-6 : f32
    %146 = vector.broadcast %cst_64 : f32 to vector<1x128xf32>
    %147 = arith.addf %144, %146 : vector<1x128xf32>
    %148 = math.rsqrt %147 : vector<1x128xf32>
    %149 = arith.mulf %145, %148 : vector<1x128xf32>
    %c1_65 = arith.constant 1 : index
    %c0_66 = arith.constant 0 : index
    %150 = vector.load %arg10[%c1_65, %c0_66] : memref<2x128xf32, #tpu.memory_space<vmem>>, vector<1x128xf32>
    %151 = arith.mulf %135, %149 : vector<1x128xf32>
    %152 = arith.subf %150, %151 : vector<1x128xf32>
    %153 = vector.broadcast %149 : vector<1x128xf32> to vector<24x128xf32>
    %154 = arith.mulf %123, %153 : vector<24x128xf32>
    %155 = vector.broadcast %152 : vector<1x128xf32> to vector<24x128xf32>
    %156 = arith.addf %154, %155 : vector<24x128xf32>
    %157 = arith.addf %124, %156 : vector<24x128xf32>
    %cst_67 = arith.constant 0.000000e+00 : f32
    %158 = vector.broadcast %cst_67 : f32 to vector<24x128xf32>
    %159 = arith.maximumf %157, %158 : vector<24x128xf32>
    %c0_68 = arith.constant 0 : index
    %c0_69 = arith.constant 0 : index
    %160 = vector.load %arg11[%c0_68, %c0_69] : memref<1x128xbf16, #tpu.memory_space<vmem>>, vector<1x128xbf16>
    %161 = arith.truncf %159 : vector<24x128xf32> to vector<24x128xbf16>
    %cst_70 = arith.constant dense<0.000000e+00> : vector<1x24xf32>
    %162 = tpu.matmul %160, %161, %cst_70 {dimension_numbers = #tpu.dot_dimension_numbers<[1], [1], [0], [0], [0, 0, 1, 0], [], []>} : vector<1x128xbf16>, vector<24x128xbf16>, vector<1x24xf32> -> vector<1x24xf32>
    %c0_71 = arith.constant 0 : index
    %c0_72 = arith.constant 0 : index
    %163 = vector.load %arg12[%c0_71, %c0_72] : memref<1x24xf32, #tpu.memory_space<vmem>>, vector<1x24xf32>
    tpu.vector_store %arg12[%c0_71, %c0_72], %162 {strides = array<i32>} : memref<1x24xf32, #tpu.memory_space<vmem>>, vector<1x24xf32>,
    return
  }
}

</mosaic_0001>

<bundles_post_ra>
// kernel: res_network_pallas.1
= control target key start
LH: loop header
LB: loop body
LE: loop exit
PB: predicated region body
PF: predicated region fallthrough
CT: control target
= control target key end

     0   :  { %17 = vsyncpa [#allocation3], 0  ;;  %s1430_s0 = inlined_call_operand.vmem [shape: bf16[24,16], index: 0, kind: input, shape index: {}]   ;;  %s1431_s1 = inlined_call_operand.vmem [shape: bf16[16,128], index: 1, kind: input, shape index: {}]   ;;  %s1432_s2 = inlined_call_operand.vmem [shape: f32[1,128], index: 2, kind: input, shape index: {}]   ;;  %s1433_s3 = inlined_call_operand.vmem [shape: bf16[128,128], index: 3, kind: input, shape index: {}]   ;;  %s1434_s4 = inlined_call_operand.vmem [shape: f32[2,128], index: 4, kind: input, shape index: {}]   ;;  %s1435_s5 = inlined_call_operand.hbm [shape: bf16[128,128], index: 5, kind: input, shape index: {}]   ;;  %s1436_s6 = inlined_call_operand.vmem [shape: f32[2,128], index: 6, kind: input, shape index: {}]   ;;  %s1437_s7 = inlined_call_operand.hbm [shape: bf16[128,128], index: 7, kind: input, shape index: {}]   ;;  %s1438_s8 = inlined_call_operand.vmem [shape: f32[2,128], index: 8, kind: input, shape index: {}]   ;;  %s1439_s9 = inlined_call_operand.hbm [shape: bf16[128,128], index: 9, kind: input, shape index: {}]   ;;  %s1440_s10 = inlined_call_operand.vmem [shape: f32[2,128], index: 10, kind: input, shape index: {}]   ;;  %s1441_s11 = inlined_call_operand.vmem [shape: bf16[1,128], index: 11, kind: input, shape index: {}]   ;;  %s1442_s12 = inlined_call_operand.vmem [shape: f32[1,24], index: 12, kind: output, shape index: {}]  }
   0x1   :  { %18 = vsyncpa [#allocation5], 0  ;;  %s1201_s21 = smov [#allocation4]   ;;  %s1202_s23 = smov [#allocation2]  }
   0x2   :  { %s48_s22 = sshll.u32 %s1201_s21, 4  ;;  %s34_s24 = sshll.u32 %s1202_s23, 4  ;;  %s49_s22 = int_to_ptr.vmem [resolvable:$true] %s48_s22  ;;  %s1273_s24 = int_to_ptr.vmem [resolvable:$true] %s34_s24 }
   0x3   :  { %s1131_s27 = scalar_lea.hbm %s1437_s7, 1024 }
   0x4   :  { %p1132_p0 = scmp.ne.s32.totalorder %s1437_s7, %s1131_s27  ;;  %p1135_p1 = scmp.lt.u32.totalorder %s1131_s27, %s1437_s7 }
   0x6   :  { %p1137_p2 = pnand %p1135_p1, %p1132_p0 }
   0x8   :  { %1140 = shalt.err (!%p1137_p2)
}
   0x9   :  { %s1141_s14 = scalar_lea.vmem %s49_s22, 1024  ;;  %p1146_p4 = scmp.lt.s32.totalorder %s49_s22, %s49_s22 }
   0xa   :  { %p1142_p3 = scmp.ne.s32.totalorder %s49_s22, %s1141_s14  ;;  %p1147_p5 = scmp.lt.s32.totalorder %s1141_s14, %s1141_s14 }
   0xc   :  { %p1148_p6 = por %p1147_p5, %p1146_p4 }
   0xe   :  { %p1149_p7 = pnand %p1148_p6, %p1142_p3 }
  0x10   :  { %1152 = shalt.err (!%p1149_p7)
}
  0x11   :  { %s1203_s15 = smov 64   ;;  %s1204_s16 = smov 4  }
  0x12   :  { %54 = dma.hbm_to_vmem [thread:$0]  %s1437_s7, 1024, %s49_s22, [#allocation5], %s1203_s15, %s1203_s15, %s1204_s16  }
  0x13   :  { %s1153_s21 = scalar_lea.hbm %s1435_s5, 1024 }
  0x14   :  { %p1154_p8 = scmp.ne.s32.totalorder %s1435_s5, %s1153_s21  ;;  %p1157_p9 = scmp.lt.u32.totalorder %s1153_s21, %s1435_s5 }
  0x16   :  { %p1159_p10 = pnand %p1157_p9, %p1154_p8 }
  0x18   :  { %1162 = shalt.err (!%p1159_p10)
}
  0x19   :  { %s1163_s28 = scalar_lea.vmem %s1273_s24, 1024  ;;  %p1168_p12 = scmp.lt.s32.totalorder %s1273_s24, %s1273_s24 }
  0x1a   :  { %p1164_p11 = scmp.ne.s32.totalorder %s1273_s24, %s1163_s28  ;;  %p1169_p13 = scmp.lt.s32.totalorder %s1163_s28, %s1163_s28 }
  0x1c   :  { %p1170_p0 = por %p1169_p13, %p1168_p12 }
  0x1e   :  { %p1171_p1 = pnand %p1170_p0, %p1164_p11 }
  0x20   :  { %1174 = shalt.err (!%p1171_p1)
}
  0x21   :  { %40 = dma.hbm_to_vmem [thread:$0]  %s1435_s5, 1024, %s1273_s24, [#allocation3], %s1203_s15, %s1203_s15, %s1204_s16  }
  0x22   :  { %s1205_s29 = smov [#allocation6]   ;;  %s1175_s17 = scalar_lea.hbm %s1439_s9, 1024 }
  0x23   :  { %s62_s30 = sshll.u32 %s1205_s29, 4  ;;  %p1176_p2 = scmp.ne.s32.totalorder %s1439_s9, %s1175_s17  ;;  %s63_s30 = int_to_ptr.vmem [resolvable:$true] %s62_s30 }
  0x24   :  { %p1179_p3 = scmp.lt.u32.totalorder %s1175_s17, %s1439_s9 }
  0x26   :  { %p1181_p4 = pnand %p1179_p3, %p1176_p2 }
  0x28   :  { %1184 = shalt.err (!%p1181_p4)
}
  0x29   :  { %s1185_s23 = scalar_lea.vmem %s63_s30, 1024  ;;  %p1190_p6 = scmp.lt.s32.totalorder %s63_s30, %s63_s30 }
  0x2a   :  { %p1186_p5 = scmp.ne.s32.totalorder %s63_s30, %s1185_s23  ;;  %p1191_p7 = scmp.lt.s32.totalorder %s1185_s23, %s1185_s23 }
  0x2c   :  { %p1192_p8 = por %p1191_p7, %p1190_p6 }
  0x2e   :  { %p1193_p9 = pnand %p1192_p8, %p1186_p5 }
  0x30   :  { %1196 = shalt.err (!%p1193_p9)
}
  0x31   :  { %68 = dma.hbm_to_vmem [thread:$0]  %s1439_s9, 1024, %s63_s30, [#allocation5], %s1203_s15, %s1203_s15, %s1204_s16  }
  0x32   :  { %1197 = dma.done.wait [#allocation3], 1024  }
  0x33   :  { %1198 = vsyncadd [#allocation3], 4294966272 }
  0x34   :  { %1199 = dma.done.wait [#allocation5], 2048  }
  0x35   :  { %1200 = vsyncadd [#allocation5], 4294965248  ;;  %v1088_v0 = vld [vmem:[%s1431_s1] sm:$0xff]   ;;  %vm109_vm0 = vcmask 130048   ;;  %v1090_v2 = vld [vmem:[%s1430_s0 + $0x8] ss:$0 sps:$4 sm:$0xff]   ;;  %v281_v32 = vlaneseq }
  0x36   :  { %v1089_v1 = vld [vmem:[%s1430_s0] sm:$0xff]   ;;  %987 = vmatprep.subr.bf16.mxu0 %v1088_v0  ;;  %v1092_v4 = vld [vmem:[%s1433_s3 + $0x8] sm:$0xff]   ;;  %v1093_v5 = vld [vmem:[%s1433_s3 + $0x10] sm:$0xff]   ;;  %vm1207_vm2 = vmmov 0   ;;  %vm895_vm3 = vcmask 188416  }
  0x37   :  { %988 = vmatpush3.bf16.msra.mxu0 %v1088_v0  ;;  %989 = vmatprep.mubr.msk.bf16.mxu0 %vm109_vm0, %v1089_v1  ;;  %v1091_v3 = vld [vmem:[%s1433_s3] sm:$0xff]   ;;  %v1094_v6 = vld [vmem:[%s1433_s3 + $0x18] sm:$0xff]   ;;  %v1096_v8 = vld [vmem:[%s1433_s3 + $0x28] sm:$0xff]   ;;  %v282_v33 = vshrl.u32 %v281_v32, 7 }
  0x38   :  { %993 = vmatprep.subr.bf16.mxu1 %v1091_v3  ;;  %v1095_v7 = vld [vmem:[%s1433_s3 + $0x20] sm:$0xff]   ;;  %v1097_v9 = vld [vmem:[%s1433_s3 + $0x30] sm:$0xff]   ;;  %v1098_v10 = vld [vmem:[%s1433_s3 + $0x38] sm:$0xff]  }
  0x39   :  { %994 = vmatpush3.bf16.msra.mxu1 %v1091_v3  ;;  %v903_v11 = vld [vmem:[%s1432_s2] ss:$0 sm:$0xff]  ;;  %v1100_v25 = vld [vmem:[#allocation2 + $0x8] sm:$0xff]   ;;  %v1101_v26 = vld [vmem:[#allocation2 + $0x10] sm:$0xff]   ;;  %v1367_v34 = vadd.s32 16, %v282_v33 }
  0x3a   :  { %990 = vmatmul.mubr.msk.bf16.vlgmr.msra.gmra.mrb[0].mxu0 %vm109_vm0, %v1090_v2  ;;  %995 = vmatprep.subr.bf16.mxu1 %v1092_v4  ;;  %v1099_v24 = vld [vmem:[#allocation2] sm:$0xff]   ;;  %v1102_v27 = vld [vmem:[#allocation2 + $0x18] sm:$0xff]   ;;  %v1104_v29 = vld [vmem:[#allocation2 + $0x28] sm:$0xff]   ;;  %v1375_v2 = vsub.s32 0, %v282_v33 }
  0x3b   :  { %1013 = vmatprep.subr.bf16.mxu0 %v1099_v24  ;;  %v1103_v28 = vld [vmem:[#allocation2 + $0x20] sm:$0xff]   ;;  %v1105_v30 = vld [vmem:[#allocation2 + $0x30] sm:$0xff]   ;;  %v1106_v31 = vld [vmem:[#allocation2 + $0x38] sm:$0xff]   ;;  %vm287_vm1 = vcmp.lt.s32.totalorder %v1367_v34, 20 }
  0x3c   :  { %1014 = vmatpush3.bf16.msra.mxu0 %v1099_v24  ;;  %v321_v1 = vld [vmem:[%s1434_s4] sm:$0x1]  ;;  %v1108_v24 = vld [vmem:[#allocation4 + $0x8] sm:$0xff]  }
  0x3d   :  { %996 = vmatpush3.bf16.msra.mxu1 %v1092_v4  ;;  %1015 = vmatprep.subr.bf16.mxu0 %v1100_v25 }
  0x3e   :  { %997 = vmatprep.subr.bf16.mxu1 %v1093_v5 }
  0x40   :  { %1016 = vmatpush3.bf16.msra.mxu0 %v1100_v25  ;;  %v1109_v25 = vld [vmem:[#allocation4 + $0x10] sm:$0xff]  }
  0x41   :  { %998 = vmatpush3.bf16.msra.mxu1 %v1093_v5  ;;  %1017 = vmatprep.subr.bf16.mxu0 %v1101_v26  ;;  %v325_v5 = vld [vmem:[%s1434_s4 + $0x1] sm:$0x1] }
  0x42   :  { %999 = vmatprep.subr.bf16.mxu1 %v1094_v6 }
  0x44   :  { %1018 = vmatpush3.bf16.msra.mxu0 %v1101_v26  ;;  %v1110_v26 = vld [vmem:[#allocation4 + $0x18] sm:$0xff]  }
  0x45   :  { %1000 = vmatpush3.bf16.msra.mxu1 %v1094_v6  ;;  %1019 = vmatprep.subr.bf16.mxu0 %v1102_v27 }
  0x46   :  { %1001 = vmatprep.subr.bf16.mxu1 %v1095_v7 }
  0x48   :  { %1020 = vmatpush3.bf16.msra.mxu0 %v1102_v27  ;;  %v1111_v27 = vld [vmem:[#allocation4 + $0x20] sm:$0xff]  }
  0x49   :  { %1002 = vmatpush3.bf16.msra.mxu1 %v1095_v7  ;;  %1021 = vmatprep.subr.bf16.mxu0 %v1103_v28 }
  0x4a   :  { %1003 = vmatprep.subr.bf16.mxu1 %v1096_v8 }
  0x4c   :  { %1022 = vmatpush3.bf16.msra.mxu0 %v1103_v28  ;;  %v1112_v28 = vld [vmem:[#allocation4 + $0x28] sm:$0xff]  }
  0x4d   :  { %1004 = vmatpush3.bf16.msra.mxu1 %v1096_v8  ;;  %1023 = vmatprep.subr.bf16.mxu0 %v1104_v29 }
  0x4e   :  { %1005 = vmatprep.subr.bf16.mxu1 %v1097_v9 }
  0x50   :  { %1024 = vmatpush3.bf16.msra.mxu0 %v1104_v29  ;;  %v1113_v29 = vld [vmem:[#allocation4 + $0x30] sm:$0xff]  }
  0x51   :  { %1006 = vmatpush3.bf16.msra.mxu1 %v1097_v9  ;;  %1025 = vmatprep.subr.bf16.mxu0 %v1105_v30 }
  0x52   :  { %1007 = vmatprep.subr.bf16.mxu1 %v1098_v10 }
  0x54   :  { %1026 = vmatpush3.bf16.msra.mxu0 %v1105_v30  ;;  %v1114_v30 = vld [vmem:[#allocation4 + $0x38] sm:$0xff]  }
  0x55   :  { %1008 = vmatpush3.bf16.msra.mxu1 %v1098_v10  ;;  %1027 = vmatprep.subr.bf16.mxu0 %v1106_v31 }
  0x58   :  { %1028 = vmatpush3.bf16.msra.mxu0 %v1106_v31 }
 0x10d   :  { %v991_v12 = vpop.f32.mrb[0].mxu0 }
 0x10e   :  { %v159_v13 = vadd.f32 %v991_v12, %v903_v11  ;;  %v150_v14 = vpop.f32.mrb[1].mxu0 }
 0x10f   :  { %v151_v15 = vadd.f32 %v903_v11, %v150_v14  ;;  %v992_v16 = vpop.f32.mrb[2].mxu0 }
 0x110   :  { %v153_v17 = vpop.f32.mrb[3].mxu0  ;;  %v166_v19 = vmax.f32 %v159_v13, 0.0 }
 0x111   :  { %v154_v18 = vadd.f32 %v903_v11, %v153_v17  ;;  %v164_v20 = vmax.f32 %v151_v15, 0.0 }
 0x112   :  { %v1363_v23 = vpack.c.bf16 %v166_v19, %v166_v19 }
 0x113   :  { %v165_v21 = vmax.f32 %v154_v18, 0.0 }
 0x115   :  { %v1361_v22 = vpack.c.bf16 %v165_v21, %v164_v20  ;;  %v1107_v21 = vld [vmem:[#allocation4] sm:$0xff]  }
 0x116   :  { %1033 = vmatprep.subr.bf16.mxu1 %v1107_v21 }
 0x117   :  { %1009 = vmatprep.mubr.bf16.mxu1 %v1361_v22 }
 0x118   :  { %1010 = vmatmul.mubr.bf16.vlgmr.msra.gmra.mrb[0].mxu1 %v1363_v23 }
 0x119   :  { %1034 = vmatpush3.bf16.msra.mxu1 %v1107_v21 }
 0x11a   :  { %1035 = vmatprep.subr.bf16.mxu1 %v1108_v24 }
 0x11d   :  { %1036 = vmatpush3.bf16.msra.mxu1 %v1108_v24 }
 0x11e   :  { %1037 = vmatprep.subr.bf16.mxu1 %v1109_v25 }
 0x121   :  { %1038 = vmatpush3.bf16.msra.mxu1 %v1109_v25 }
 0x122   :  { %1039 = vmatprep.subr.bf16.mxu1 %v1110_v26 }
 0x125   :  { %1040 = vmatpush3.bf16.msra.mxu1 %v1110_v26  ;;  %v1117_v26 = vld [vmem:[#allocation6 + $0x10] sm:$0xff]  }
 0x126   :  { %1041 = vmatprep.subr.bf16.mxu1 %v1111_v27 }
 0x129   :  { %1042 = vmatpush3.bf16.msra.mxu1 %v1111_v27  ;;  %v1118_v27 = vld [vmem:[#allocation6 + $0x18] sm:$0xff]  }
 0x12a   :  { %1043 = vmatprep.subr.bf16.mxu1 %v1112_v28 }
 0x12d   :  { %1044 = vmatpush3.bf16.msra.mxu1 %v1112_v28  ;;  %v1119_v28 = vld [vmem:[#allocation6 + $0x20] sm:$0xff]  }
 0x12e   :  { %1045 = vmatprep.subr.bf16.mxu1 %v1113_v29 }
 0x131   :  { %1046 = vmatpush3.bf16.msra.mxu1 %v1113_v29  ;;  %v1120_v29 = vld [vmem:[#allocation6 + $0x28] sm:$0xff]  }
 0x132   :  { %1047 = vmatprep.subr.bf16.mxu1 %v1114_v30 }
 0x135   :  { %1048 = vmatpush3.bf16.msra.mxu1 %v1114_v30  ;;  %v1121_v30 = vld [vmem:[#allocation6 + $0x30] sm:$0xff]  }
 0x1eb   :  { %v1011_v35 = vpop.f32.mrb[0].mxu1 }
 0x1ec   :  { %v267_v36 = vpop.f32.mrb[1].mxu1  ;;  %v296_v38 = vsel %vm287_vm1, %v1011_v35, 0.0 }
 0x1ed   :  { %v1012_v37 = vpop.f32.mrb[2].mxu1  ;;  %v306_v40 = vmul.f32 %v267_v36, %v267_v36  ;;  %v308_v43 = vmul.f32 %v296_v38, %v296_v38 }
 0x1ee   :  { %v270_v39 = vpop.f32.mrb[3].mxu1 }
 0x1ef   :  { %v297_v41 = vadd.f32 %v270_v39, %v267_v36  ;;  %v307_v42 = vmul.f32 %v270_v39, %v270_v39 }
 0x1f1   :  { %v298_v44 = vadd.f32 %v297_v41, %v296_v38  ;;  %v309_v45 = vadd.f32 %v307_v42, %v306_v40 }
 0x1f3   :  { %v299_v46 = vrot.slane %v298_v44, 4  ;;  %v310_v47 = vadd.f32 %v309_v45, %v308_v43 }
 0x1f5   :  { %v300_v48 = vadd.f32 %v299_v46, %v298_v44  ;;  %v311_v49 = vrot.slane %v310_v47, 4 }
 0x1f7   :  { %v301_v50 = vrot.slane %v300_v48, 2  ;;  %v312_v51 = vadd.f32 %v311_v49, %v310_v47 }
 0x1f9   :  { %v302_v52 = vadd.f32 %v301_v50, %v300_v48  ;;  %v313_v53 = vrot.slane %v312_v51, 2 }
 0x1fb   :  { %v303_v54 = vrot.slane %v302_v52, 1  ;;  %v314_v55 = vadd.f32 %v313_v53, %v312_v51 }
 0x1fd   :  { %v304_v56 = vadd.f32 %v303_v54, %v302_v52  ;;  %v315_v57 = vrot.slane %v314_v55, 1 }
 0x1ff   :  { %v305_v58 = vmul.f32 0.05, %v304_v56  ;;  %v316_v59 = vadd.f32 %v315_v57, %v314_v55 }
 0x201   :  { %v317_v60 = vmul.f32 0.05, %v316_v59  ;;  %v318_v61 = vmul.f32 %v305_v58, %v305_v58 }
 0x203   :  { %v319_v62 = vsub.f32 %v317_v60, %v318_v61 }
 0x205   :  { %v320_v63 = vmax.f32 %v319_v62, 0.0  ;;  %v489_v62 = vld [vmem:[%s1436_s6] sm:$0x1] }
 0x207   :  { %v322_v0 = vadd.f32 1e-05, %v320_v63 }
 0x209   :  { %1123 = vrsqrt.f32 %v322_v0 }
 0x213   :  { %v1124_v3 = vpop.eup %1123 }
 0x214   :  { %v324_v4 = vmul.f32 %v1124_v3, %v321_v1  ;;  %v493_v1 = vld [vmem:[%s1436_s6 + $0x1] sm:$0x1] }
 0x216   :  { %v326_v6 = vmul.f32 %v324_v4, %v305_v58  ;;  %v331_v7 = vrot.slane %v324_v4, %v1375_v2 }
 0x218   :  { %v327_v8 = vsub.f32 %v325_v5, %v326_v6  ;;  %v333_v9 = vmul.f32 %v331_v7, %v270_v39  ;;  %v332_v10 = vmul.f32 %v331_v7, %v267_v36  ;;  %v334_v11 = vmul.f32 %v1011_v35, %v331_v7 }
 0x21a   :  { %v338_v12 = vrot.slane %v327_v8, %v1375_v2 }
 0x21c   :  { %v340_v13 = vadd.f32 %v338_v12, %v333_v9  ;;  %v339_v14 = vadd.f32 %v338_v12, %v332_v10  ;;  %v341_v15 = vadd.f32 %v338_v12, %v334_v11  ;;  %v461_v10 = vunpack.c.l.bf16 %v1363_v23  ;;  %v1115_v23 = vld [vmem:[#allocation6] sm:$0xff]  }
 0x21d   :  { %v459_v11 = vunpack.c.l.bf16 %v1361_v22  ;;  %v460_v12 = vunpack.c.h.bf16 %v1361_v22  ;;  %1053 = vmatprep.subr.bf16.mxu0 %v1115_v23  ;;  %v1116_v22 = vld [vmem:[#allocation6 + $0x8] sm:$0xff]  }
 0x21e   :  { %v342_v16 = vmax.f32 %v339_v14, 0.0  ;;  %v343_v17 = vmax.f32 %v340_v13, 0.0  ;;  %v344_v18 = vmax.f32 %v341_v15, 0.0 }
 0x220   :  { %v345_v19 = vpack.c.bf16 %v343_v17, %v342_v16  ;;  %v346_v20 = vpack.c.bf16 %v344_v18, %v344_v18 }
 0x222   :  { %1029 = vmatprep.mubr.bf16.mxu0 %v345_v19 }
 0x223   :  { %1030 = vmatmul.mubr.bf16.vlgmr.msra.gmra.mrb[4].mxu0 %v346_v20 }
 0x224   :  { %1054 = vmatpush3.bf16.msra.mxu0 %v1115_v23 }
 0x225   :  { %1055 = vmatprep.subr.bf16.mxu0 %v1116_v22 }
 0x228   :  { %1056 = vmatpush3.bf16.msra.mxu0 %v1116_v22 }
 0x229   :  { %1057 = vmatprep.subr.bf16.mxu0 %v1117_v26 }
 0x22c   :  { %1058 = vmatpush3.bf16.msra.mxu0 %v1117_v26 }
 0x22d   :  { %1059 = vmatprep.subr.bf16.mxu0 %v1118_v27 }
 0x230   :  { %1060 = vmatpush3.bf16.msra.mxu0 %v1118_v27 }
 0x231   :  { %1061 = vmatprep.subr.bf16.mxu0 %v1119_v28 }
 0x234   :  { %1062 = vmatpush3.bf16.msra.mxu0 %v1119_v28 }
 0x235   :  { %1063 = vmatprep.subr.bf16.mxu0 %v1120_v29 }
 0x238   :  { %1064 = vmatpush3.bf16.msra.mxu0 %v1120_v29 }
 0x239   :  { %1065 = vmatprep.subr.bf16.mxu0 %v1121_v30 }
 0x23c   :  { %1066 = vmatpush3.bf16.msra.mxu0 %v1121_v30 }
 0x2f6   :  { %v1031_v31 = vpop.f32.mrb[4].mxu0 }
 0x2f7   :  { %v445_v32 = vpop.f32.mrb[5].mxu0  ;;  %v464_v35 = vsel %vm287_vm1, %v1031_v31, 0.0 }
 0x2f8   :  { %v1032_v33 = vpop.f32.mrb[6].mxu0  ;;  %v474_v37 = vmul.f32 %v445_v32, %v445_v32  ;;  %v476_v40 = vmul.f32 %v464_v35, %v464_v35 }
 0x2f9   :  { %v448_v36 = vpop.f32.mrb[7].mxu0 }
 0x2fa   :  { %v465_v38 = vadd.f32 %v448_v36, %v445_v32  ;;  %v475_v39 = vmul.f32 %v448_v36, %v448_v36 }
 0x2fc   :  { %v466_v41 = vadd.f32 %v465_v38, %v464_v35  ;;  %v477_v42 = vadd.f32 %v475_v39, %v474_v37 }
 0x2fe   :  { %v467_v43 = vrot.slane %v466_v41, 4  ;;  %v478_v44 = vadd.f32 %v477_v42, %v476_v40 }
 0x300   :  { %v468_v45 = vadd.f32 %v467_v43, %v466_v41  ;;  %v479_v46 = vrot.slane %v478_v44, 4 }
 0x302   :  { %v469_v47 = vrot.slane %v468_v45, 2  ;;  %v480_v48 = vadd.f32 %v479_v46, %v478_v44 }
 0x304   :  { %v470_v49 = vadd.f32 %v469_v47, %v468_v45  ;;  %v481_v50 = vrot.slane %v480_v48, 2 }
 0x306   :  { %v471_v51 = vrot.slane %v470_v49, 1  ;;  %v482_v52 = vadd.f32 %v481_v50, %v480_v48 }
 0x308   :  { %v472_v53 = vadd.f32 %v471_v51, %v470_v49  ;;  %v483_v54 = vrot.slane %v482_v52, 1 }
 0x30a   :  { %v473_v55 = vmul.f32 0.05, %v472_v53  ;;  %v484_v56 = vadd.f32 %v483_v54, %v482_v52 }
 0x30c   :  { %v485_v57 = vmul.f32 0.05, %v484_v56  ;;  %v486_v58 = vmul.f32 %v473_v55, %v473_v55 }
 0x30e   :  { %v487_v59 = vsub.f32 %v485_v57, %v486_v58 }
 0x310   :  { %v488_v60 = vmax.f32 %v487_v59, 0.0 }
 0x312   :  { %v490_v61 = vadd.f32 1e-05, %v488_v60 }
 0x314   :  { %1125 = vrsqrt.f32 %v490_v61 }
 0x31e   :  { %v1126_v63 = vpop.eup %1125 }
 0x31f   :  { %v492_v0 = vmul.f32 %v1126_v63, %v489_v62  ;;  %v657_v63 = vld [vmem:[%s1438_s8] sm:$0x1] }
 0x321   :  { %v494_v3 = vmul.f32 %v492_v0, %v473_v55  ;;  %v499_v4 = vrot.slane %v492_v0, %v1375_v2 }
 0x323   :  { %v495_v5 = vsub.f32 %v493_v1, %v494_v3  ;;  %v501_v6 = vmul.f32 %v499_v4, %v448_v36  ;;  %v500_v7 = vmul.f32 %v499_v4, %v445_v32  ;;  %v502_v8 = vmul.f32 %v1031_v31, %v499_v4  ;;  %v1122_v31 = vld [vmem:[#allocation6 + $0x38] sm:$0xff]   ;;  %v661_v3 = vld [vmem:[%s1438_s8 + $0x1] sm:$0x1] }
 0x324   :  { %1067 = vmatprep.subr.bf16.mxu0 %v1122_v31 }
 0x325   :  { %v506_v9 = vrot.slane %v495_v5, %v1375_v2  ;;  %1068 = vmatpush3.bf16.msra.mxu0 %v1122_v31 }
 0x327   :  { %v508_v13 = vadd.f32 %v506_v9, %v501_v6  ;;  %v507_v14 = vadd.f32 %v506_v9, %v500_v7  ;;  %v509_v15 = vadd.f32 %v506_v9, %v502_v8 }
 0x329   :  { %v510_v16 = vadd.f32 %v507_v14, %v459_v11  ;;  %v511_v17 = vadd.f32 %v508_v13, %v460_v12  ;;  %v512_v18 = vadd.f32 %v509_v15, %v461_v10 }
 0x32b   :  { %v513_v19 = vmax.f32 %v510_v16, 0.0  ;;  %v514_v20 = vmax.f32 %v511_v17, 0.0  ;;  %v515_v21 = vmax.f32 %v512_v18, 0.0 }
 0x32d   :  { %v1395_v24 = vpack.c.bf16 %v514_v20, %v513_v19  ;;  %v1397_v25 = vpack.c.bf16 %v515_v21, %v515_v21  ;;  %v1206_v19 = vmov 0.0  }
 0x32e   :  { %1073 = vmatprep.subr.bf16.mxu1 %v1206_v19 }
 0x32f   :  { %1049 = vmatprep.mubr.bf16.mxu1 %v1395_v24 }
 0x330   :  { %1050 = vmatmul.mubr.bf16.vlgmr.msra.gmra.mrb[4].mxu1 %v1397_v25 }
 0x331   :  { %1077 = vmatprep.mubr.msk.bf16.mxu1 %vm1207_vm2, %v1206_v19 }
 0x403   :  { %v1051_v32 = vpop.f32.mrb[4].mxu1 }
 0x404   :  { %v616_v33 = vpop.f32.mrb[5].mxu1  ;;  %v632_v36 = vsel %vm287_vm1, %v1051_v32, 0.0 }
 0x405   :  { %v1052_v35 = vpop.f32.mrb[6].mxu1  ;;  %v642_v38 = vmul.f32 %v616_v33, %v616_v33  ;;  %v644_v41 = vmul.f32 %v632_v36, %v632_v36 }
 0x406   :  { %v619_v37 = vpop.f32.mrb[7].mxu1 }
 0x407   :  { %v633_v39 = vadd.f32 %v619_v37, %v616_v33  ;;  %v643_v40 = vmul.f32 %v619_v37, %v619_v37 }
 0x409   :  { %v634_v42 = vadd.f32 %v633_v39, %v632_v36  ;;  %v645_v43 = vadd.f32 %v643_v40, %v642_v38 }
 0x40b   :  { %v635_v44 = vrot.slane %v634_v42, 4  ;;  %v646_v45 = vadd.f32 %v645_v43, %v644_v41 }
 0x40d   :  { %v636_v46 = vadd.f32 %v635_v44, %v634_v42  ;;  %v647_v47 = vrot.slane %v646_v45, 4 }
 0x40f   :  { %v637_v48 = vrot.slane %v636_v46, 2  ;;  %v648_v49 = vadd.f32 %v647_v47, %v646_v45 }
 0x411   :  { %v638_v50 = vadd.f32 %v637_v48, %v636_v46  ;;  %v649_v51 = vrot.slane %v648_v49, 2 }
 0x413   :  { %v639_v52 = vrot.slane %v638_v50, 1  ;;  %v650_v53 = vadd.f32 %v649_v51, %v648_v49 }
 0x415   :  { %v640_v54 = vadd.f32 %v639_v52, %v638_v50  ;;  %v651_v55 = vrot.slane %v650_v53, 1  ;;  %v825_v52 = vld [vmem:[%s1440_s10] sm:$0x1] }
 0x417   :  { %v641_v56 = vmul.f32 0.05, %v640_v54  ;;  %v652_v57 = vadd.f32 %v651_v55, %v650_v53  ;;  %v829_v55 = vld [vmem:[%s1440_s10 + $0x1] sm:$0x1] }
 0x419   :  { %v653_v58 = vmul.f32 0.05, %v652_v57  ;;  %v654_v59 = vmul.f32 %v641_v56, %v641_v56 }
 0x41b   :  { %v655_v60 = vsub.f32 %v653_v58, %v654_v59 }
 0x41d   :  { %v656_v61 = vmax.f32 %v655_v60, 0.0 }
 0x41f   :  { %v658_v62 = vadd.f32 1e-05, %v656_v61 }
 0x421   :  { %1127 = vrsqrt.f32 %v658_v62 }
 0x42b   :  { %v1128_v0 = vpop.eup %1127 }
 0x42c   :  { %v660_v1 = vmul.f32 %v1128_v0, %v657_v63  ;;  %v795_v63 = vunpack.c.l.bf16 %v1395_v24  ;;  %v797_v0 = vunpack.c.l.bf16 %v1397_v25 }
 0x42e   :  { %v662_v4 = vmul.f32 %v660_v1, %v641_v56  ;;  %v667_v5 = vrot.slane %v660_v1, %v1375_v2  ;;  %v796_v1 = vunpack.c.h.bf16 %v1395_v24 }
 0x430   :  { %v663_v6 = vsub.f32 %v661_v3, %v662_v4  ;;  %v669_v7 = vmul.f32 %v667_v5, %v619_v37  ;;  %v668_v8 = vmul.f32 %v667_v5, %v616_v33  ;;  %v670_v9 = vmul.f32 %v1051_v32, %v667_v5 }
 0x432   :  { %v674_v10 = vrot.slane %v663_v6, %v1375_v2 }
 0x434   :  { %v676_v11 = vadd.f32 %v674_v10, %v669_v7  ;;  %v675_v12 = vadd.f32 %v674_v10, %v668_v8  ;;  %v677_v13 = vadd.f32 %v674_v10, %v670_v9 }
 0x436   :  { %v678_v14 = vmax.f32 %v675_v12, 0.0  ;;  %v679_v15 = vmax.f32 %v676_v11, 0.0  ;;  %v680_v16 = vmax.f32 %v677_v13, 0.0 }
 0x438   :  { %v681_v17 = vpack.c.bf16 %v679_v15, %v678_v14  ;;  %v682_v18 = vpack.c.bf16 %v680_v16, %v680_v16 }
 0x43a   :  { %1069 = vmatprep.mubr.bf16.mxu0 %v681_v17 }
 0x43b   :  { %1070 = vmatmul.mubr.bf16.vlgmr.msra.gmra.mrb[8].mxu0 %v682_v18 }
 0x50e   :  { %v1071_v20 = vpop.f32.mrb[8].mxu0 }
 0x50f   :  { %v781_v21 = vpop.f32.mrb[9].mxu0  ;;  %v800_v22 = vsel %vm287_vm1, %v1071_v20, 0.0 }
 0x510   :  { %v1072_v23 = vpop.f32.mrb[10].mxu0  ;;  %v810_v27 = vmul.f32 %v781_v21, %v781_v21  ;;  %v812_v30 = vmul.f32 %v800_v22, %v800_v22 }
 0x511   :  { %v784_v26 = vpop.f32.mrb[11].mxu0 }
 0x512   :  { %v801_v28 = vadd.f32 %v784_v26, %v781_v21  ;;  %v811_v29 = vmul.f32 %v784_v26, %v784_v26 }
 0x514   :  { %v802_v31 = vadd.f32 %v801_v28, %v800_v22  ;;  %v813_v32 = vadd.f32 %v811_v29, %v810_v27 }
 0x516   :  { %v803_v33 = vrot.slane %v802_v31, 4  ;;  %v814_v35 = vadd.f32 %v813_v32, %v812_v30 }
 0x518   :  { %v804_v36 = vadd.f32 %v803_v33, %v802_v31  ;;  %v815_v37 = vrot.slane %v814_v35, 4 }
 0x51a   :  { %v805_v38 = vrot.slane %v804_v36, 2  ;;  %v816_v39 = vadd.f32 %v815_v37, %v814_v35 }
 0x51c   :  { %v806_v40 = vadd.f32 %v805_v38, %v804_v36  ;;  %v817_v41 = vrot.slane %v816_v39, 2 }
 0x51e   :  { %v807_v42 = vrot.slane %v806_v40, 1  ;;  %v818_v43 = vadd.f32 %v817_v41, %v816_v39 }
 0x520   :  { %v808_v44 = vadd.f32 %v807_v42, %v806_v40  ;;  %v819_v34 = vrot.slane %v818_v43, 1 }
 0x522   :  { %v809_v45 = vmul.f32 0.05, %v808_v44  ;;  %v820_v46 = vadd.f32 %v819_v34, %v818_v43 }
 0x524   :  { %v821_v47 = vmul.f32 0.05, %v820_v46  ;;  %v822_v48 = vmul.f32 %v809_v45, %v809_v45 }
 0x526   :  { %v823_v49 = vsub.f32 %v821_v47, %v822_v48 }
 0x528   :  { %v824_v50 = vmax.f32 %v823_v49, 0.0 }
 0x52a   :  { %v826_v51 = vadd.f32 1e-05, %v824_v50 }
 0x52c   :  { %1129 = vrsqrt.f32 %v826_v51 }
 0x536   :  { %v1130_v53 = vpop.eup %1129 }
 0x537   :  { %v828_v54 = vmul.f32 %v1130_v53, %v825_v52 }
 0x539   :  { %v830_v56 = vmul.f32 %v828_v54, %v809_v45  ;;  %v835_v57 = vrot.slane %v828_v54, %v1375_v2 }
 0x53b   :  { %v831_v58 = vsub.f32 %v829_v55, %v830_v56  ;;  %v836_v59 = vmul.f32 %v835_v57, %v781_v21  ;;  %v837_v60 = vmul.f32 %v835_v57, %v784_v26  ;;  %v838_v61 = vmul.f32 %v1071_v20, %v835_v57 }
 0x53d   :  { %v842_v62 = vrot.slane %v831_v58, %v1375_v2  ;;  %v852_v2 = vld [vmem:[%s1441_s11] sm:$0x1] }
 0x53f   :  { %v844_v3 = vadd.f32 %v842_v62, %v837_v60  ;;  %v843_v4 = vadd.f32 %v842_v62, %v836_v59  ;;  %v845_v5 = vadd.f32 %v842_v62, %v838_v61 }
 0x541   :  { %v847_v6 = vadd.f32 %v844_v3, %v796_v1  ;;  %v846_v7 = vadd.f32 %v843_v4, %v795_v63  ;;  %v848_v8 = vadd.f32 %v845_v5, %v797_v0 }
 0x543   :  { %v850_v9 = vmax.f32 %v847_v6, 0.0  ;;  %v849_v10 = vmax.f32 %v846_v7, 0.0  ;;  %v851_v12 = vmax.f32 %v848_v8, 0.0 }
 0x545   :  { %v853_v11 = vpack.c.bf16 %v850_v9, %v849_v10  ;;  %v854_v13 = vpack.c.bf16 %v851_v12, %v851_v12 }
 0x547   :  { %1074 = vmatpush3.bf16.xpose.msra.mxu1 %v853_v11 }
 0x548   :  { %1075 = vmatprep.subr.bf16.mxu1 %v1206_v19 }
 0x54f   :  { %1076 = vmatpush3.bf16.xpose.msra.mxu1 %v854_v13 }
 0x556   :  { %1078 = vmatmul.mubr.bf16.vlgmr.msra.gmra.mrb[8].mxu1 %v852_v2 }
 0x629   :  { %v889_v24 = vpop.f32.mrb[8].mxu1 }
 0x62a   :  { %896 = vst.msk [vmem:[%s1442_s12] sm:$0x1] %vm895_vm3, %v889_v24  ;;  %v1079_v25 = vpop.f32.mrb[9].mxu1 }
 0x62b   :  { %v892_v14 = vpop.f32.mrb[10].mxu1 }
 0x62c   :  { %v1080_v15 = vpop.f32.mrb[11].mxu1 }
 0x62d   :  { %901 = vsyncpa [#allocation3], 1 }
 0x62e   :  { %902 = vsyncpa [#allocation5], 1 }

</bundles_post_ra>
